<compile_context>
chip_gen: v7x
topology: tpu7x:2x2x1
jax: 0.10.0
libtpu: 0.0.40
codegen_flags: <defaults>
</compile_context>

<pallas_src>
import functools

import jax
import jax.numpy as jnp
from jax.experimental import pallas as pl
from jax.experimental.pallas import tpu as pltpu


def _round_up(n: int, m: int) -> int:
    return (n + m - 1) // m * m


def _decoder_kernel(x_ref, w1_ref, b1_ref, w2_ref, b2_ref, o_ref):
    # First linear: [TM, Z] @ [Z, E_pad] + [1, E_pad]  (f32 accumulate on MXU)
    h = jnp.dot(x_ref[...], w1_ref[...], preferred_element_type=jnp.float32)
    h = h + b1_ref[...]
    # Dropout (eval mode) -> identity ; ReLU on the VPU
    h = jnp.maximum(h, 0.0)
    # Second linear: [TM, E_pad] @ [E_pad, OUT_pad] + [1, OUT_pad]
    # (h stays f32; weights are f32, so no downcast of the accumulator.)
    out = jnp.dot(h, w2_ref[...], preferred_element_type=jnp.float32)
    out = out + b2_ref[...]
    o_ref[...] = out.astype(o_ref.dtype)


@functools.partial(jax.jit, static_argnames=("tm",))
def decoder_forward(x, w1, b1, w2, b2, *, tm: int = 256):
    """Forward pass of get_decoder_layer (eval mode).

    x : [B, Z_DIM]
    w1: [Z_DIM, EMBED_SIZE]   (PyTorch weight transposed to [in, out])
    b1: [EMBED_SIZE]
    w2: [EMBED_SIZE, OUT]     (transposed to [in, out])
    b2: [OUT]
    returns [B, OUT]
    """
    B, Z = x.shape
    E = w1.shape[1]
    OUT = w2.shape[1]

    # Lane-dense padding of the hidden and output feature dims (multiple of 128).
    E_pad = _round_up(E, 128)
    OUT_pad = _round_up(OUT, 128)

    # Batch tile: multiple of 8 (f32 sublane), capped by tm.
    TM = min(tm, _round_up(B, 8))
    B_pad = _round_up(B, TM)

    x_p = jnp.pad(x, ((0, B_pad - B), (0, 0)))
    w1_p = jnp.pad(w1, ((0, 0), (0, E_pad - E)))
    b1_p = jnp.pad(b1.reshape(1, E), ((0, 0), (0, E_pad - E)))
    w2_p = jnp.pad(w2, ((0, E_pad - E), (0, OUT_pad - OUT)))
    b2_p = jnp.pad(b2.reshape(1, OUT), ((0, 0), (0, OUT_pad - OUT)))

    grid = (B_pad // TM,)

    flops = 2 * B_pad * Z * E_pad + 2 * B_pad * E_pad * OUT_pad
    bytes_accessed = 4 * (
        B_pad * Z + Z * E_pad + E_pad + E_pad * OUT_pad + OUT_pad + B_pad * OUT_pad
    )

    out_pad = pl.pallas_call(
        _decoder_kernel,
        out_shape=jax.ShapeDtypeStruct((B_pad, OUT_pad), x.dtype),
        grid_spec=pltpu.PrefetchScalarGridSpec(
            num_scalar_prefetch=0,
            grid=grid,
            in_specs=[
                pl.BlockSpec((TM, Z), lambda i: (i, 0)),          # x rows: pipelined
                pl.BlockSpec((Z, E_pad), lambda i: (0, 0)),       # w1: VMEM-resident
                pl.BlockSpec((1, E_pad), lambda i: (0, 0)),       # b1
                pl.BlockSpec((E_pad, OUT_pad), lambda i: (0, 0)),  # w2
                pl.BlockSpec((1, OUT_pad), lambda i: (0, 0)),     # b2
            ],
            out_specs=pl.BlockSpec((TM, OUT_pad), lambda i: (i, 0)),
        ),
        compiler_params=pltpu.CompilerParams(
            dimension_semantics=("parallel",),
        ),
        cost_estimate=pl.CostEstimate(
            flops=flops, transcendentals=0, bytes_accessed=bytes_accessed
        ),
    )(x_p, w1_p, b1_p, w2_p, b2_p)

    return out_pad[:B, :OUT]


def reference_forward(x, w1, b1, w2, b2):
    h = jnp.maximum(x @ w1 + b1, 0.0)  # dropout(eval) == identity
    return h @ w2 + b2


if __name__ == "__main__":
    # Small shapes consistent with the module's forward: x is [batch, Z_DIM].
    B, Z_DIM, EMBED_SIZE, OUT = 512, 16, 64, 32
    key = jax.random.PRNGKey(0)
    kx, kw1, kb1, kw2, kb2 = jax.random.split(key, 5)

    x = jax.random.normal(kx, (B, Z_DIM), dtype=jnp.float32)
    # Deterministic synthetic parameters (PyTorch Linear weights stored
    # transposed to [in, out] for row-major matmul).
    w1 = jax.random.normal(kw1, (Z_DIM, EMBED_SIZE), dtype=jnp.float32) * 0.1
    b1 = jax.random.normal(kb1, (EMBED_SIZE,), dtype=jnp.float32) * 0.1
    w2 = jax.random.normal(kw2, (EMBED_SIZE, OUT), dtype=jnp.float32) * 0.1
    b2 = jax.random.normal(kb2, (OUT,), dtype=jnp.float32) * 0.1

    out = decoder_forward(x, w1, b1, w2, b2, tm=256)
    out = jax.block_until_ready(out)

    ref = reference_forward(x, w1, b1, w2, b2)
    assert out.shape == (B, OUT), out.shape
    assert jnp.allclose(out, ref, atol=1e-4, rtol=1e-4)

    print("KERNEL_OK")
</pallas_src>

<mosaic_0001>
module attributes {stable_mosaic.version = 11 : i64} {
  func.func @_decoder_kernel(%arg0: i32, %arg1: memref<256x16xf32, #tpu.memory_space<vmem>>, %arg2: memref<16x128xf32, #tpu.memory_space<vmem>>, %arg3: memref<1x128xf32, #tpu.memory_space<vmem>>, %arg4: memref<128x128xf32, #tpu.memory_space<vmem>>, %arg5: memref<1x128xf32, #tpu.memory_space<vmem>>, %arg6: memref<256x128xf32, #tpu.memory_space<vmem>>) attributes {dimension_semantics = [#tpu.dimension_semantics<parallel>], iteration_bounds = array<i64: 2>, scalar_prefetch = 0 : i64, scratch_operands = 0 : i64, tpu.core_type = #tpu.core_type<tc>, window_params = [{transform_indices = @transform_0, window_bounds = array<i64: 256, 16>}, {pipeline_mode = #tpu.pipeline_mode<synchronous>, transform_indices = @transform_1, window_bounds = array<i64: 16, 128>}, {pipeline_mode = #tpu.pipeline_mode<synchronous>, transform_indices = @transform_2, window_bounds = array<i64: 1, 128>}, {pipeline_mode = #tpu.pipeline_mode<synchronous>, transform_indices = @transform_3, window_bounds = array<i64: 128, 128>}, {pipeline_mode = #tpu.pipeline_mode<synchronous>, transform_indices = @transform_4, window_bounds = array<i64: 1, 128>}, {transform_indices = @transform_5, window_bounds = array<i64: 256, 128>}]} {
    %c0 = arith.constant 0 : index
    %c0_0 = arith.constant 0 : index
    %0 = vector.load %arg1[%c0, %c0_0] : memref<256x16xf32, #tpu.memory_space<vmem>>, vector<256x16xf32>
    %c0_1 = arith.constant 0 : index
    %c0_2 = arith.constant 0 : index
    %1 = vector.load %arg2[%c0_1, %c0_2] : memref<16x128xf32, #tpu.memory_space<vmem>>, vector<16x128xf32>
    %cst = arith.constant dense<0.000000e+00> : vector<256x128xf32>
    %2 = tpu.matmul %0, %1, %cst {dimension_numbers = #tpu.dot_dimension_numbers<[1], [0], [0], [1], [0, 0, 1, 1], [], []>} : vector<256x16xf32>, vector<16x128xf32>, vector<256x128xf32> -> vector<256x128xf32>
    %c0_3 = arith.constant 0 : index
    %c0_4 = arith.constant 0 : index
    %3 = vector.load %arg3[%c0_3, %c0_4] : memref<1x128xf32, #tpu.memory_space<vmem>>, vector<1x128xf32>
    %4 = vector.broadcast %3 : vector<1x128xf32> to vector<256x128xf32>
    %5 = arith.addf %2, %4 : vector<256x128xf32>
    %cst_5 = arith.constant 0.000000e+00 : f32
    %6 = vector.broadcast %cst_5 : f32 to vector<256x128xf32>
    %7 = arith.maximumf %5, %6 : vector<256x128xf32>
    %c0_6 = arith.constant 0 : index
    %c0_7 = arith.constant 0 : index
    %8 = vector.load %arg4[%c0_6, %c0_7] : memref<128x128xf32, #tpu.memory_space<vmem>>, vector<128x128xf32>
    %cst_8 = arith.constant dense<0.000000e+00> : vector<256x128xf32>
    %9 = tpu.matmul %7, %8, %cst_8 {dimension_numbers = #tpu.dot_dimension_numbers<[1], [0], [0], [1], [0, 0, 1, 1], [], []>} : vector<256x128xf32>, vector<128x128xf32>, vector<256x128xf32> -> vector<256x128xf32>
    %c0_9 = arith.constant 0 : index
    %c0_10 = arith.constant 0 : index
    %10 = vector.load %arg5[%c0_9, %c0_10] : memref<1x128xf32, #tpu.memory_space<vmem>>, vector<1x128xf32>
    %11 = vector.broadcast %10 : vector<1x128xf32> to vector<256x128xf32>
    %12 = arith.addf %9, %11 : vector<256x128xf32>
    %c0_11 = arith.constant 0 : index
    %c0_12 = arith.constant 0 : index
    %13 = vector.load %arg6[%c0_11, %c0_12] : memref<256x128xf32, #tpu.memory_space<vmem>>, vector<256x128xf32>
    tpu.vector_store %arg6[%c0_11, %c0_12], %12 {strides = array<i32>} : memref<256x128xf32, #tpu.memory_space<vmem>>, vector<256x128xf32>,
    return
  }
  func.func @transform_0(%arg0: i32) -> (i32, i32) {
    %c0_i32 = arith.constant 0 : i32
    %c0_i32_0 = arith.constant 0 : i32
    return %arg0, %c0_i32 : i32, i32
  }
  func.func @transform_1(%arg0: i32) -> (i32, i32) {
    %c0_i32 = arith.constant 0 : i32
    %c0_i32_0 = arith.constant 0 : i32
    %c0_i32_1 = arith.constant 0 : i32
    return %c0_i32, %c0_i32_0 : i32, i32
  }
  func.func @transform_2(%arg0: i32) -> (i32, i32) {
    %c0_i32 = arith.constant 0 : i32
    %c0_i32_0 = arith.constant 0 : i32
    %c0_i32_1 = arith.constant 0 : i32
    return %c0_i32, %c0_i32_0 : i32, i32
  }
  func.func @transform_3(%arg0: i32) -> (i32, i32) {
    %c0_i32 = arith.constant 0 : i32
    %c0_i32_0 = arith.constant 0 : i32
    %c0_i32_1 = arith.constant 0 : i32
    return %c0_i32, %c0_i32_0 : i32, i32
  }
  func.func @transform_4(%arg0: i32) -> (i32, i32) {
    %c0_i32 = arith.constant 0 : i32
    %c0_i32_0 = arith.constant 0 : i32
    %c0_i32_1 = arith.constant 0 : i32
    return %c0_i32, %c0_i32_0 : i32, i32
  }
  func.func @transform_5(%arg0: i32) -> (i32, i32) {
    %c0_i32 = arith.constant 0 : i32
    %c0_i32_0 = arith.constant 0 : i32
    return %arg0, %c0_i32 : i32, i32
  }
}

</mosaic_0001>

<bundles_post_ra>
// kernel: decoder_forward.1
= control target key start
LH: loop header
LB: loop body
LE: loop exit
PB: predicated region body
PF: predicated region fallthrough
CT: control target
= control target key end

     0   :  { %s1316_s18 = smov 0   ;;  %s1568_s0 = inlined_call_operand.vmem [shape: f32[512,16], index: 0, kind: input, shape index: {}]   ;;  %s1569_s1 = inlined_call_operand.vmem [shape: f32[16,128], index: 1, kind: input, shape index: {}]   ;;  %s1570_s2 = inlined_call_operand.vmem [shape: f32[1,128], index: 2, kind: input, shape index: {}]   ;;  %s1571_s3 = inlined_call_operand.vmem [shape: f32[128,128], index: 3, kind: input, shape index: {}]   ;;  %s1572_s4 = inlined_call_operand.vmem [shape: f32[1,128], index: 4, kind: input, shape index: {}]   ;;  %s1573_s5 = inlined_call_operand.vmem [shape: f32[512,128], index: 5, kind: output, shape index: {}]  }
   0x1 LB: > { %s959_s19 = sadd.s32 4294967295, %s1284_s18   ;;  %p963_p0 = scmp.ge.s32.totalorder %s1284_s18, 1  ;;  %s1284_s18 = sphi %s1316_s18, %s15_s18  }
   0x2   : > { %p188_p1 = scmp.lt.s32.totalorder %s1284_s18, 3 }
   0x4   : > { %p189_p2 = pnand %p963_p0, %p188_p1 }
   0x5   : > { %v260_v0 = vld [vmem:[%s1569_s1] sm:$0xff] (!%p189_p2)  ;;  %v261_v1 = vld [vmem:[%s1569_s1 + $0x8] sm:$0xff] (!%p189_p2)  ;;  %s964_s24 = sshll.u32 (!%p189_p2), %s959_s19, 5  ;;  %v625_v5 = vld [vmem:[%s1571_s3 + $0x10] sm:$0xff] (!%p189_p2)  ;;  %vm269_vm0 = vcmask (!%p189_p2), 130048  }
   0x6   : > { %192 = sbr.rel (%p189_p2) target bundleno = 512 (0x200), region = 40  ;;  %v623_v2 = vld [vmem:[%s1571_s3] sm:$0xff] (!%p189_p2)  ;;  %v1218_v3 = vpack.c.bf16 (!%p189_p2), %v261_v1, %v260_v0  ;;  %p217_p3 = scmp.lt.s32.totalorder (!%p189_p2), %s964_s24, 63  ;;  %v624_v4 = vld [vmem:[%s1571_s3 + $0x8] sm:$0xff] (!%p189_p2)  ;;  %v626_v6 = vld [vmem:[%s1571_s3 + $0x18] sm:$0xff] (!%p189_p2) }
   0x7   : > { %v1222_v7 = vpack.c.bf16 (!%p189_p2), %v624_v4, %v623_v2  ;;  %v1226_v8 = vpack.c.bf16 (!%p189_p2), %v626_v6, %v625_v5  ;;  %v627_v9 = vld [vmem:[%s1571_s3 + $0x20] sm:$0xff] (!%p189_p2)  ;;  %v628_v10 = vld [vmem:[%s1571_s3 + $0x28] sm:$0xff] (!%p189_p2)  ;;  %v629_v16 = vld [vmem:[%s1571_s3 + $0x30] sm:$0xff] (!%p189_p2) }
   0x8   : > { %1219 = vmatprep.subr.bf16.mxu0 (!%p189_p2), %v1218_v3  ;;  %v1230_v14 = vpack.c.bf16 (!%p189_p2), %v628_v10, %v627_v9  ;;  %v630_v17 = vld [vmem:[%s1571_s3 + $0x38] sm:$0xff] (!%p189_p2)  ;;  %v631_v21 = vld [vmem:[%s1571_s3 + $0x40] sm:$0xff] (!%p189_p2)  ;;  %v632_v22 = vld [vmem:[%s1571_s3 + $0x48] sm:$0xff] (!%p189_p2) }
   0x9   : > { %1221 = vmatpush3.bf16.msra.mxu0 (!%p189_p2), %v1218_v3  ;;  %1254 = vmatprep.subr.bf16.mxu1 (!%p189_p2), %v1222_v7  ;;  %v1234_v19 = vpack.c.bf16 (!%p189_p2), %v630_v17, %v629_v16  ;;  %v1238_v24 = vpack.c.bf16 (!%p189_p2), %v632_v22, %v631_v21  ;;  %v633_v26 = vld [vmem:[%s1571_s3 + $0x50] sm:$0xff] (!%p189_p2)  ;;  %v634_v27 = vld [vmem:[%s1571_s3 + $0x58] sm:$0xff] (!%p189_p2)  ;;  %v635_v31 = vld [vmem:[%s1571_s3 + $0x60] sm:$0xff] (!%p189_p2) }
   0xa   : > { %1223 = vmatprep.subr.bf16.mxu0 (!%p189_p2), %v1222_v7  ;;  %1262 = vmatpush3.bf16.msra.mxu1 (!%p189_p2), %v1222_v7  ;;  %v1242_v29 = vpack.c.bf16 (!%p189_p2), %v634_v27, %v633_v26  ;;  %v636_v32 = vld [vmem:[%s1571_s3 + $0x68] sm:$0xff] (!%p189_p2)  ;;  %v637_v56 = vld [vmem:[%s1571_s3 + $0x70] sm:$0xff] (!%p189_p2)  ;;  %v638_v57 = vld [vmem:[%s1571_s3 + $0x78] sm:$0xff] (!%p189_p2) }
   0xb   : > { %1255 = vmatprep.subr.bf16.mxu1 (!%p189_p2), %v1226_v8  ;;  %v1246_v34 = vpack.c.bf16 (!%p189_p2), %v636_v32, %v635_v31  ;;  %v1250_v58 = vpack.c.bf16 (!%p189_p2), %v638_v57, %v637_v56  ;;  %v1455_v59 = vld [vmem:[%s1570_s2] ss:$0 sm:$0xff] (!%p189_p2) }
   0xd   : > { %s1575_s24 = smov (!%p217_p3, %s964_s24), 63 }
   0xe   : > { %s965_s8 = sshll.u32 %s1575_s24, 3  ;;  %1263 = vmatpush3.bf16.msra.mxu1 %v1226_v8 }
   0xf   : > { %s1350_s11 = scalar_lea.vmem %s1568_s0, %s965_s8  ;;  %1256 = vmatprep.subr.bf16.mxu1 %v1230_v14  ;;  %s1499_s21 = scalar_lea.vmem %s1573_s5, %s965_s8 }
  0x10   : > { %v228_v11 = vld [vmem:[%s1350_s11] sm:$0xff]  ;;  %v229_v12 = vld [vmem:[%s1350_s11 + $0x8] sm:$0xff]  ;;  %v230_v13 = vld [vmem:[%s1350_s11 + $0x10] sm:$0xff] }
  0x11   : > { %1090 = vmatprep.mubr.msk.f32.mxu0 %vm269_vm0, %v228_v11  ;;  %v231_v15 = vld [vmem:[%s1350_s11 + $0x18] sm:$0xff]  ;;  %v232_v18 = vld [vmem:[%s1350_s11 + $0x20] sm:$0xff]  ;;  %v233_v20 = vld [vmem:[%s1350_s11 + $0x28] sm:$0xff] }
  0x12   : > { %1091 = vmatmul.mubr.msk.f32.vlgmr.msra.gmra.mrb[0].mxu0 %vm269_vm0, %v229_v12  ;;  %1264 = vmatpush3.bf16.msra.mxu1 %v1230_v14  ;;  %v234_v23 = vld [vmem:[%s1350_s11 + $0x30] sm:$0xff]  ;;  %v235_v25 = vld [vmem:[%s1350_s11 + $0x38] sm:$0xff]  ;;  %v236_v28 = vld [vmem:[%s1350_s11 + $0x40] sm:$0xff] }
  0x13   : > { %1093 = vmatprep.mubr.msk.f32.mxu0 %vm269_vm0, %v230_v13  ;;  %1225 = vmatpush3.bf16.msra.mxu0 %v1222_v7  ;;  %v237_v30 = vld [vmem:[%s1350_s11 + $0x48] sm:$0xff]  ;;  %v238_v33 = vld [vmem:[%s1350_s11 + $0x50] sm:$0xff]  ;;  %v239_v35 = vld [vmem:[%s1350_s11 + $0x58] sm:$0xff] }
  0x14   : > { %1227 = vmatprep.subr.bf16.mxu0 %v1226_v8  ;;  %1257 = vmatprep.subr.bf16.mxu1 %v1234_v19  ;;  %v240_v36 = vld [vmem:[%s1350_s11 + $0x60] sm:$0xff]  ;;  %v241_v37 = vld [vmem:[%s1350_s11 + $0x68] sm:$0xff]  ;;  %v242_v38 = vld [vmem:[%s1350_s11 + $0x70] sm:$0xff] }
  0x15   : > { %v243_v39 = vld [vmem:[%s1350_s11 + $0x78] sm:$0xff]  ;;  %v244_v40 = vld [vmem:[%s1350_s11 + $0x80] sm:$0xff]  ;;  %v245_v41 = vld [vmem:[%s1350_s11 + $0x88] sm:$0xff] }
  0x16   : > { %1094 = vmatmul.mubr.msk.f32.gmra.mrb[2].mxu0 %vm269_vm0, %v231_v15  ;;  %1265 = vmatpush3.bf16.msra.mxu1 %v1234_v19  ;;  %v246_v42 = vld [vmem:[%s1350_s11 + $0x90] sm:$0xff]  ;;  %v247_v43 = vld [vmem:[%s1350_s11 + $0x98] sm:$0xff]  ;;  %v248_v44 = vld [vmem:[%s1350_s11 + $0xa0] sm:$0xff] }
  0x17   : > { %1096 = vmatprep.mubr.msk.f32.mxu0 %vm269_vm0, %v232_v18  ;;  %1229 = vmatpush3.bf16.msra.mxu0 %v1226_v8  ;;  %v249_v45 = vld [vmem:[%s1350_s11 + $0xa8] sm:$0xff]  ;;  %v250_v46 = vld [vmem:[%s1350_s11 + $0xb0] sm:$0xff]  ;;  %v251_v47 = vld [vmem:[%s1350_s11 + $0xb8] sm:$0xff] }
  0x18   : > { %1231 = vmatprep.subr.bf16.mxu0 %v1230_v14  ;;  %1258 = vmatprep.subr.bf16.mxu1 %v1238_v24  ;;  %v252_v48 = vld [vmem:[%s1350_s11 + $0xc0] sm:$0xff]  ;;  %v253_v49 = vld [vmem:[%s1350_s11 + $0xc8] sm:$0xff]  ;;  %v254_v50 = vld [vmem:[%s1350_s11 + $0xd0] sm:$0xff] }
  0x19   : > { %v255_v51 = vld [vmem:[%s1350_s11 + $0xd8] sm:$0xff]  ;;  %v256_v52 = vld [vmem:[%s1350_s11 + $0xe0] sm:$0xff]  ;;  %v257_v53 = vld [vmem:[%s1350_s11 + $0xe8] sm:$0xff] }
  0x1a   : > { %1097 = vmatmul.mubr.msk.f32.gmra.mrb[4].mxu0 %vm269_vm0, %v233_v20  ;;  %1266 = vmatpush3.bf16.msra.mxu1 %v1238_v24  ;;  %v258_v54 = vld [vmem:[%s1350_s11 + $0xf0] sm:$0xff]  ;;  %v259_v55 = vld [vmem:[%s1350_s11 + $0xf8] sm:$0xff] }
  0x1b   : > { %1099 = vmatprep.mubr.msk.f32.mxu0 %vm269_vm0, %v234_v23  ;;  %1233 = vmatpush3.bf16.msra.mxu0 %v1230_v14 }
  0x1c   : > { %1235 = vmatprep.subr.bf16.mxu0 %v1234_v19  ;;  %1259 = vmatprep.subr.bf16.mxu1 %v1242_v29 }
  0x1e   : > { %1100 = vmatmul.mubr.msk.f32.gmra.mrb[6].mxu0 %vm269_vm0, %v235_v25  ;;  %1267 = vmatpush3.bf16.msra.mxu1 %v1242_v29 }
  0x1f   : > { %1102 = vmatprep.mubr.msk.f32.mxu0 %vm269_vm0, %v236_v28  ;;  %1237 = vmatpush3.bf16.msra.mxu0 %v1234_v19 }
  0x20   : > { %1239 = vmatprep.subr.bf16.mxu0 %v1238_v24  ;;  %1260 = vmatprep.subr.bf16.mxu1 %v1246_v34 }
  0x22   : > { %1103 = vmatmul.mubr.msk.f32.gmra.mrb[8].mxu0 %vm269_vm0, %v237_v30  ;;  %1268 = vmatpush3.bf16.msra.mxu1 %v1246_v34 }
  0x23   : > { %1105 = vmatprep.mubr.msk.f32.mxu0 %vm269_vm0, %v238_v33  ;;  %1241 = vmatpush3.bf16.msra.mxu0 %v1238_v24 }
  0x24   : > { %1243 = vmatprep.subr.bf16.mxu0 %v1242_v29  ;;  %1261 = vmatprep.subr.bf16.mxu1 %v1250_v58 }
  0x26   : > { %1106 = vmatmul.mubr.msk.f32.gmra.mrb[10].mxu0 %vm269_vm0, %v239_v35  ;;  %1269 = vmatpush3.bf16.msra.mxu1 %v1250_v58 }
  0x27   : > { %1108 = vmatprep.mubr.msk.f32.mxu0 %vm269_vm0, %v240_v36  ;;  %1245 = vmatpush3.bf16.msra.mxu0 %v1242_v29 }
  0x28   : > { %1247 = vmatprep.subr.bf16.mxu0 %v1246_v34 }
  0x2a   : > { %1109 = vmatmul.mubr.msk.f32.gmra.mrb[12].mxu0 %vm269_vm0, %v241_v37 }
  0x2b   : > { %1111 = vmatprep.mubr.msk.f32.mxu0 %vm269_vm0, %v242_v38  ;;  %1249 = vmatpush3.bf16.msra.mxu0 %v1246_v34 }
  0x2c   : > { %1251 = vmatprep.subr.bf16.mxu0 %v1250_v58 }
  0x2e   : > { %1112 = vmatmul.mubr.msk.f32.gmra.mrb[14].mxu0 %vm269_vm0, %v243_v39 }
  0x2f   : > { %1114 = vmatprep.mubr.msk.f32.mxu0 %vm269_vm0, %v244_v40  ;;  %1253 = vmatpush3.bf16.msra.mxu0 %v1250_v58 }
  0x32   : > { %1115 = vmatmul.mubr.msk.f32.gmra.mrb[16].mxu0 %vm269_vm0, %v245_v41 }
  0x33   : > { %1117 = vmatprep.mubr.msk.f32.mxu0 %vm269_vm0, %v246_v42 }
  0x36   : > { %1118 = vmatmul.mubr.msk.f32.gmra.mrb[18].mxu0 %vm269_vm0, %v247_v43 }
  0x37   : > { %1120 = vmatprep.mubr.msk.f32.mxu0 %vm269_vm0, %v248_v44 }
  0x3a   : > { %1121 = vmatmul.mubr.msk.f32.gmra.mrb[20].mxu0 %vm269_vm0, %v249_v45 }
  0x3b   : > { %1123 = vmatprep.mubr.msk.f32.mxu0 %vm269_vm0, %v250_v46 }
  0x3e   : > { %1124 = vmatmul.mubr.msk.f32.gmra.mrb[22].mxu0 %vm269_vm0, %v251_v47 }
  0x3f   : > { %1126 = vmatprep.mubr.msk.f32.mxu0 %vm269_vm0, %v252_v48 }
  0x42   : > { %1127 = vmatmul.mubr.msk.f32.gmra.mrb[24].mxu0 %vm269_vm0, %v253_v49 }
  0x43   : > { %1129 = vmatprep.mubr.msk.f32.mxu0 %vm269_vm0, %v254_v50 }
  0x46   : > { %1130 = vmatmul.mubr.msk.f32.gmra.mrb[26].mxu0 %vm269_vm0, %v255_v51 }
  0x47   : > { %1132 = vmatprep.mubr.msk.f32.mxu0 %vm269_vm0, %v256_v52 }
  0x4a   : > { %1133 = vmatmul.mubr.msk.f32.gmra.mrb[28].mxu0 %vm269_vm0, %v257_v53 }
  0x4b   : > { %1135 = vmatprep.mubr.msk.f32.mxu0 %vm269_vm0, %v258_v54 }
  0x4e   : > { %1136 = vmatmul.mubr.msk.f32.gmra.mrb[30].mxu0 %vm269_vm0, %v259_v55 }
  0xe5   : > { %v1092_v60 = vpop.f32.mrb[0].mxu0 }
  0xe6   : > { %v438_v61 = vadd.f32 %v1092_v60, %v1455_v59  ;;  %v432_v62 = vpop.f32.mrb[1].mxu0 }
  0xe7   : > { %v433_v63 = vadd.f32 %v1455_v59, %v432_v62 }
  0xe8   : > { %v592_v2 = vmax.f32 %v438_v61, 0.0 }
  0xe9   : > { %v591_v0 = vmax.f32 %v433_v63, 0.0  ;;  %v1095_v1 = vpop.f32.mrb[2].mxu0 }
  0xea   : > { %v448_v3 = vadd.f32 %v1095_v1, %v1455_v59  ;;  %v442_v4 = vpop.f32.mrb[3].mxu0 }
  0xeb   : > { %v443_v5 = vadd.f32 %v1455_v59, %v442_v4  ;;  %1170 = vmatprep.mubr.f32.mxu0 %v591_v0 }
  0xec   : > { %1171 = vmatmul.mubr.f32.vlgmr.msra.gmra.mrb[32].mxu0 %v592_v2  ;;  %v594_v8 = vmax.f32 %v448_v3, 0.0 }
  0xed   : > { %v593_v6 = vmax.f32 %v443_v5, 0.0  ;;  %v1098_v7 = vpop.f32.mrb[4].mxu0 }
  0xee   : > { %v458_v9 = vadd.f32 %v1098_v7, %v1455_v59  ;;  %v452_v10 = vpop.f32.mrb[5].mxu0 }
  0xef   : > { %v453_v11 = vadd.f32 %v1455_v59, %v452_v10  ;;  %1173 = vmatprep.mubr.f32.mxu0 %v593_v6 }
  0xf0   : > { %1174 = vmatmul.mubr.f32.gmra.mrb[34].mxu0 %v594_v8  ;;  %v596_v14 = vmax.f32 %v458_v9, 0.0 }
  0xf1   : > { %v595_v12 = vmax.f32 %v453_v11, 0.0  ;;  %v1101_v13 = vpop.f32.mrb[6].mxu0 }
  0xf2   : > { %v468_v15 = vadd.f32 %v1101_v13, %v1455_v59  ;;  %v462_v16 = vpop.f32.mrb[7].mxu0 }
  0xf3   : > { %1176 = vmatprep.mubr.f32.mxu0 %v595_v12  ;;  %v463_v17 = vadd.f32 %v1455_v59, %v462_v16 }
  0xf4   : > { %1177 = vmatmul.mubr.f32.gmra.mrb[36].mxu0 %v596_v14  ;;  %v598_v20 = vmax.f32 %v468_v15, 0.0 }
  0xf5   : > { %v1104_v18 = vpop.f32.mrb[8].mxu0  ;;  %v597_v19 = vmax.f32 %v463_v17, 0.0 }
  0xf6   : > { %v478_v21 = vadd.f32 %v1104_v18, %v1455_v59  ;;  %v472_v22 = vpop.f32.mrb[9].mxu0 }
  0xf7   : > { %v473_v23 = vadd.f32 %v1455_v59, %v472_v22  ;;  %1179 = vmatprep.mubr.f32.mxu1 %v597_v19 }
  0xf8   : > { %1180 = vmatmul.mubr.f32.vlgmr.msra.gmra.mrb[0].mxu1 %v598_v20  ;;  %v600_v26 = vmax.f32 %v478_v21, 0.0 }
  0xf9   : > { %v599_v24 = vmax.f32 %v473_v23, 0.0  ;;  %v1107_v25 = vpop.f32.mrb[10].mxu0 }
  0xfa   : > { %v488_v27 = vadd.f32 %v1107_v25, %v1455_v59  ;;  %v482_v28 = vpop.f32.mrb[11].mxu0 }
  0xfb   : > { %v483_v29 = vadd.f32 %v1455_v59, %v482_v28  ;;  %1182 = vmatprep.mubr.f32.mxu1 %v599_v24 }
  0xfc   : > { %1183 = vmatmul.mubr.f32.gmra.mrb[2].mxu1 %v600_v26  ;;  %v602_v32 = vmax.f32 %v488_v27, 0.0 }
  0xfd   : > { %v601_v30 = vmax.f32 %v483_v29, 0.0  ;;  %v1110_v31 = vpop.f32.mrb[12].mxu0  ;;  %v1492_v29 = vld [vmem:[%s1572_s4] ss:$0 sm:$0xff] }
  0xfe   : > { %v498_v33 = vadd.f32 %v1110_v31, %v1455_v59  ;;  %v492_v34 = vpop.f32.mrb[13].mxu0 }
  0xff   : > { %v493_v35 = vadd.f32 %v1455_v59, %v492_v34  ;;  %1185 = vmatprep.mubr.f32.mxu1 %v601_v30 }
 0x100   : > { %1186 = vmatmul.mubr.f32.gmra.mrb[4].mxu1 %v602_v32  ;;  %v604_v38 = vmax.f32 %v498_v33, 0.0 }
 0x101   : > { %v603_v36 = vmax.f32 %v493_v35, 0.0  ;;  %v1113_v37 = vpop.f32.mrb[14].mxu0 }
 0x102   : > { %v508_v39 = vadd.f32 %v1113_v37, %v1455_v59  ;;  %v502_v40 = vpop.f32.mrb[15].mxu0 }
 0x103   : > { %v503_v41 = vadd.f32 %v1455_v59, %v502_v40  ;;  %1188 = vmatprep.mubr.f32.mxu1 %v603_v36 }
 0x104   : > { %1189 = vmatmul.mubr.f32.gmra.mrb[6].mxu1 %v604_v38  ;;  %v606_v44 = vmax.f32 %v508_v39, 0.0 }
 0x105   : > { %v605_v42 = vmax.f32 %v503_v41, 0.0  ;;  %v1116_v43 = vpop.f32.mrb[16].mxu0 }
 0x106   : > { %v518_v45 = vadd.f32 %v1116_v43, %v1455_v59  ;;  %v512_v46 = vpop.f32.mrb[17].mxu0 }
 0x107   : > { %v513_v47 = vadd.f32 %v1455_v59, %v512_v46  ;;  %1191 = vmatprep.mubr.f32.mxu1 %v605_v42 }
 0x108   : > { %1192 = vmatmul.mubr.f32.gmra.mrb[8].mxu1 %v606_v44  ;;  %v608_v50 = vmax.f32 %v518_v45, 0.0 }
 0x109   : > { %v607_v48 = vmax.f32 %v513_v47, 0.0  ;;  %v1119_v49 = vpop.f32.mrb[18].mxu0 }
 0x10a   : > { %v528_v51 = vadd.f32 %v1119_v49, %v1455_v59  ;;  %v522_v52 = vpop.f32.mrb[19].mxu0 }
 0x10b   : > { %v523_v53 = vadd.f32 %v1455_v59, %v522_v52  ;;  %1194 = vmatprep.mubr.f32.mxu1 %v607_v48 }
 0x10c   : > { %1195 = vmatmul.mubr.f32.gmra.mrb[10].mxu1 %v608_v50  ;;  %v610_v56 = vmax.f32 %v528_v51, 0.0 }
 0x10d   : > { %v609_v54 = vmax.f32 %v523_v53, 0.0  ;;  %v1122_v55 = vpop.f32.mrb[20].mxu0 }
 0x10e   : > { %v538_v57 = vadd.f32 %v1122_v55, %v1455_v59  ;;  %v532_v58 = vpop.f32.mrb[21].mxu0 }
 0x10f   : > { %v533_v60 = vadd.f32 %v1455_v59, %v532_v58  ;;  %1197 = vmatprep.mubr.f32.mxu1 %v609_v54 }
 0x110   : > { %1198 = vmatmul.mubr.f32.gmra.mrb[12].mxu1 %v610_v56  ;;  %v612_v63 = vmax.f32 %v538_v57, 0.0 }
 0x111   : > { %v611_v61 = vmax.f32 %v533_v60, 0.0  ;;  %v1125_v62 = vpop.f32.mrb[22].mxu0 }
 0x112   : > { %v548_v0 = vadd.f32 %v1125_v62, %v1455_v59  ;;  %v542_v1 = vpop.f32.mrb[23].mxu0 }
 0x113   : > { %v543_v2 = vadd.f32 %v1455_v59, %v542_v1  ;;  %1200 = vmatprep.mubr.f32.mxu1 %v611_v61 }
 0x114   : > { %1201 = vmatmul.mubr.f32.gmra.mrb[14].mxu1 %v612_v63  ;;  %v614_v5 = vmax.f32 %v548_v0, 0.0 }
 0x115   : > { %v613_v3 = vmax.f32 %v543_v2, 0.0  ;;  %v1128_v4 = vpop.f32.mrb[24].mxu0 }
 0x116   : > { %v558_v6 = vadd.f32 %v1128_v4, %v1455_v59  ;;  %v552_v7 = vpop.f32.mrb[25].mxu0 }
 0x117   : > { %v553_v8 = vadd.f32 %v1455_v59, %v552_v7  ;;  %1203 = vmatprep.mubr.f32.mxu1 %v613_v3 }
 0x118   : > { %1204 = vmatmul.mubr.f32.gmra.mrb[16].mxu1 %v614_v5  ;;  %v616_v11 = vmax.f32 %v558_v6, 0.0 }
 0x119   : > { %v615_v9 = vmax.f32 %v553_v8, 0.0  ;;  %v1131_v10 = vpop.f32.mrb[26].mxu0 }
 0x11a   : > { %v568_v12 = vadd.f32 %v1131_v10, %v1455_v59  ;;  %v562_v13 = vpop.f32.mrb[27].mxu0 }
 0x11b   : > { %v563_v14 = vadd.f32 %v1455_v59, %v562_v13  ;;  %1206 = vmatprep.mubr.f32.mxu1 %v615_v9 }
 0x11c   : > { %1207 = vmatmul.mubr.f32.gmra.mrb[18].mxu1 %v616_v11  ;;  %v618_v17 = vmax.f32 %v568_v12, 0.0 }
 0x11d   : > { %v617_v15 = vmax.f32 %v563_v14, 0.0  ;;  %v1134_v16 = vpop.f32.mrb[28].mxu0 }
 0x11e   : > { %v578_v18 = vadd.f32 %v1134_v16, %v1455_v59  ;;  %v572_v19 = vpop.f32.mrb[29].mxu0 }
 0x11f   : > { %v573_v20 = vadd.f32 %v1455_v59, %v572_v19  ;;  %1209 = vmatprep.mubr.f32.mxu1 %v617_v15 }
 0x120   : > { %1210 = vmatmul.mubr.f32.gmra.mrb[20].mxu1 %v618_v17  ;;  %v620_v23 = vmax.f32 %v578_v18, 0.0 }
 0x121   : > { %v619_v21 = vmax.f32 %v573_v20, 0.0  ;;  %v1137_v22 = vpop.f32.mrb[30].mxu0 }
 0x122   : > { %v588_v24 = vadd.f32 %v1137_v22, %v1455_v59  ;;  %v582_v25 = vpop.f32.mrb[31].mxu0 }
 0x123   : > { %v583_v26 = vadd.f32 %v1455_v59, %v582_v25  ;;  %1212 = vmatprep.mubr.f32.mxu1 %v619_v21 }
 0x124   : > { %1213 = vmatmul.mubr.f32.gmra.mrb[22].mxu1 %v620_v23  ;;  %v622_v28 = vmax.f32 %v588_v24, 0.0 }
 0x125   : > { %v621_v27 = vmax.f32 %v583_v26, 0.0 }
 0x127   : > { %1215 = vmatprep.mubr.f32.mxu1 %v621_v27 }
 0x128   : > { %1216 = vmatmul.mubr.f32.gmra.mrb[24].mxu1 %v622_v28 }
 0x1bf   : > { %v1172_v59 = vpop.f32.mrb[32].mxu0 }
 0x1c0   : > { %v718_v30 = vadd.f32 %v1172_v59, %v1492_v29  ;;  %v712_v31 = vpop.f32.mrb[33].mxu0 }
 0x1c1   : > { %v713_v32 = vadd.f32 %v1492_v29, %v712_v31 }
 0x1c2   : > { %872 = vst [vmem:[%s1499_s21 + $0x8] sm:$0xff] %v718_v30 }
 0x1c3   : > { %871 = vst [vmem:[%s1499_s21] sm:$0xff] %v713_v32  ;;  %v1175_v33 = vpop.f32.mrb[34].mxu0 }
 0x1c4   : > { %v728_v34 = vadd.f32 %v1175_v33, %v1492_v29  ;;  %v722_v35 = vpop.f32.mrb[35].mxu0 }
 0x1c5   : > { %v723_v36 = vadd.f32 %v1492_v29, %v722_v35 }
 0x1c6   : > { %874 = vst [vmem:[%s1499_s21 + $0x18] sm:$0xff] %v728_v34 }
 0x1c7   : > { %873 = vst [vmem:[%s1499_s21 + $0x10] sm:$0xff] %v723_v36  ;;  %v1178_v37 = vpop.f32.mrb[36].mxu0 }
 0x1c8   : > { %v738_v38 = vadd.f32 %v1178_v37, %v1492_v29  ;;  %v732_v39 = vpop.f32.mrb[37].mxu0 }
 0x1c9   : > { %v733_v40 = vadd.f32 %v1492_v29, %v732_v39 }
 0x1ca   : > { %876 = vst [vmem:[%s1499_s21 + $0x28] sm:$0xff] %v738_v38 }
 0x1cb   : > { %875 = vst [vmem:[%s1499_s21 + $0x20] sm:$0xff] %v733_v40  ;;  %v1181_v41 = vpop.f32.mrb[0].mxu1 }
 0x1cc   : > { %v748_v42 = vadd.f32 %v1181_v41, %v1492_v29  ;;  %v742_v43 = vpop.f32.mrb[1].mxu1 }
 0x1cd   : > { %v743_v44 = vadd.f32 %v1492_v29, %v742_v43 }
 0x1ce   : > { %878 = vst [vmem:[%s1499_s21 + $0x38] sm:$0xff] %v748_v42 }
 0x1cf   : > { %877 = vst [vmem:[%s1499_s21 + $0x30] sm:$0xff] %v743_v44  ;;  %v1184_v45 = vpop.f32.mrb[2].mxu1 }
 0x1d0   : > { %v758_v46 = vadd.f32 %v1184_v45, %v1492_v29  ;;  %v752_v47 = vpop.f32.mrb[3].mxu1 }
 0x1d1   : > { %v753_v48 = vadd.f32 %v1492_v29, %v752_v47 }
 0x1d2   : > { %880 = vst [vmem:[%s1499_s21 + $0x48] sm:$0xff] %v758_v46 }
 0x1d3   : > { %879 = vst [vmem:[%s1499_s21 + $0x40] sm:$0xff] %v753_v48  ;;  %v1187_v49 = vpop.f32.mrb[4].mxu1 }
 0x1d4   : > { %v768_v50 = vadd.f32 %v1187_v49, %v1492_v29  ;;  %v762_v51 = vpop.f32.mrb[5].mxu1 }
 0x1d5   : > { %v763_v52 = vadd.f32 %v1492_v29, %v762_v51 }
 0x1d6   : > { %882 = vst [vmem:[%s1499_s21 + $0x58] sm:$0xff] %v768_v50 }
 0x1d7   : > { %881 = vst [vmem:[%s1499_s21 + $0x50] sm:$0xff] %v763_v52  ;;  %v1190_v53 = vpop.f32.mrb[6].mxu1 }
 0x1d8   : > { %v778_v54 = vadd.f32 %v1190_v53, %v1492_v29  ;;  %v772_v55 = vpop.f32.mrb[7].mxu1 }
 0x1d9   : > { %v773_v56 = vadd.f32 %v1492_v29, %v772_v55 }
 0x1da   : > { %884 = vst [vmem:[%s1499_s21 + $0x68] sm:$0xff] %v778_v54 }
 0x1db   : > { %883 = vst [vmem:[%s1499_s21 + $0x60] sm:$0xff] %v773_v56  ;;  %v1193_v57 = vpop.f32.mrb[8].mxu1 }
 0x1dc   : > { %v788_v58 = vadd.f32 %v1193_v57, %v1492_v29  ;;  %v782_v60 = vpop.f32.mrb[9].mxu1 }
 0x1dd   : > { %v783_v61 = vadd.f32 %v1492_v29, %v782_v60 }
 0x1de   : > { %886 = vst [vmem:[%s1499_s21 + $0x78] sm:$0xff] %v788_v58 }
 0x1df   : > { %885 = vst [vmem:[%s1499_s21 + $0x70] sm:$0xff] %v783_v61  ;;  %v1196_v62 = vpop.f32.mrb[10].mxu1 }
 0x1e0   : > { %v798_v63 = vadd.f32 %v1196_v62, %v1492_v29  ;;  %v792_v0 = vpop.f32.mrb[11].mxu1 }
 0x1e1   : > { %v793_v1 = vadd.f32 %v1492_v29, %v792_v0 }
 0x1e2   : > { %888 = vst [vmem:[%s1499_s21 + $0x88] sm:$0xff] %v798_v63 }
 0x1e3   : > { %887 = vst [vmem:[%s1499_s21 + $0x80] sm:$0xff] %v793_v1  ;;  %v1199_v2 = vpop.f32.mrb[12].mxu1 }
 0x1e4   : > { %v808_v3 = vadd.f32 %v1199_v2, %v1492_v29  ;;  %v802_v4 = vpop.f32.mrb[13].mxu1 }
 0x1e5   : > { %v803_v5 = vadd.f32 %v1492_v29, %v802_v4 }
 0x1e6   : > { %890 = vst [vmem:[%s1499_s21 + $0x98] sm:$0xff] %v808_v3 }
 0x1e7   : > { %889 = vst [vmem:[%s1499_s21 + $0x90] sm:$0xff] %v803_v5  ;;  %v1202_v6 = vpop.f32.mrb[14].mxu1 }
 0x1e8   : > { %v818_v7 = vadd.f32 %v1202_v6, %v1492_v29  ;;  %v812_v8 = vpop.f32.mrb[15].mxu1 }
 0x1e9   : > { %v813_v9 = vadd.f32 %v1492_v29, %v812_v8 }
 0x1ea   : > { %892 = vst [vmem:[%s1499_s21 + $0xa8] sm:$0xff] %v818_v7 }
 0x1eb   : > { %891 = vst [vmem:[%s1499_s21 + $0xa0] sm:$0xff] %v813_v9  ;;  %v1205_v10 = vpop.f32.mrb[16].mxu1 }
 0x1ec   : > { %v828_v11 = vadd.f32 %v1205_v10, %v1492_v29  ;;  %v822_v12 = vpop.f32.mrb[17].mxu1 }
 0x1ed   : > { %v823_v13 = vadd.f32 %v1492_v29, %v822_v12 }
 0x1ee   : > { %894 = vst [vmem:[%s1499_s21 + $0xb8] sm:$0xff] %v828_v11 }
 0x1ef   : > { %893 = vst [vmem:[%s1499_s21 + $0xb0] sm:$0xff] %v823_v13  ;;  %v1208_v14 = vpop.f32.mrb[18].mxu1 }
 0x1f0   : > { %v838_v15 = vadd.f32 %v1208_v14, %v1492_v29  ;;  %v832_v16 = vpop.f32.mrb[19].mxu1 }
 0x1f1   : > { %v833_v17 = vadd.f32 %v1492_v29, %v832_v16 }
 0x1f2   : > { %896 = vst [vmem:[%s1499_s21 + $0xc8] sm:$0xff] %v838_v15 }
 0x1f3   : > { %895 = vst [vmem:[%s1499_s21 + $0xc0] sm:$0xff] %v833_v17  ;;  %v1211_v18 = vpop.f32.mrb[20].mxu1 }
 0x1f4   : > { %v848_v19 = vadd.f32 %v1211_v18, %v1492_v29  ;;  %v842_v20 = vpop.f32.mrb[21].mxu1 }
 0x1f5   : > { %v843_v21 = vadd.f32 %v1492_v29, %v842_v20 }
 0x1f6   : > { %898 = vst [vmem:[%s1499_s21 + $0xd8] sm:$0xff] %v848_v19 }
 0x1f7   : > { %897 = vst [vmem:[%s1499_s21 + $0xd0] sm:$0xff] %v843_v21  ;;  %v1214_v22 = vpop.f32.mrb[22].mxu1 }
 0x1f8   : > { %v858_v23 = vadd.f32 %v1214_v22, %v1492_v29  ;;  %v852_v24 = vpop.f32.mrb[23].mxu1 }
 0x1f9   : > { %v853_v25 = vadd.f32 %v1492_v29, %v852_v24 }
 0x1fa   : > { %900 = vst [vmem:[%s1499_s21 + $0xe8] sm:$0xff] %v858_v23 }
 0x1fb   : > { %899 = vst [vmem:[%s1499_s21 + $0xe0] sm:$0xff] %v853_v25  ;;  %v1217_v26 = vpop.f32.mrb[24].mxu1 }
 0x1fc   : > { %v868_v27 = vadd.f32 %v1217_v26, %v1492_v29  ;;  %v862_v28 = vpop.f32.mrb[25].mxu1 }
 0x1fd   : > { %v863_v59 = vadd.f32 %v1492_v29, %v862_v28 }
 0x1fe   : > { %902 = vst [vmem:[%s1499_s21 + $0xf8] sm:$0xff] %v868_v27 }
 0x1ff   : > { %901 = vst [vmem:[%s1499_s21 + $0xf0] sm:$0xff] %v863_v59 }
 0x200 PF: > { %s15_s18 = sadd.s32 1, %s1284_s18  }
 0x201   : > { %p12_p4 = scmp.ge.s32.totalorder %s15_s18, 4  }
 0x203   :  { %14 = sbr.rel (!%p12_p4) target bundleno = 1 (0x1), region = 70 }

</bundles_post_ra>
